<compile_context>
chip_gen: v6e
topology: v6e:2x2x1
jax: 0.10.0
libtpu: 0.0.40
codegen_flags: <defaults>
</compile_context>

<pallas_src>
import functools

import jax
import jax.numpy as jnp
from jax import lax
from jax.experimental import pallas as pl
from jax.experimental.pallas import tpu as pltpu


def _round_up(x: int, m: int) -> int:
    return (x + m - 1) // m * m


def cross_attention_kernel(img_ref, txt_ref,
                           wq_ref, bq_ref,
                           wkv_ref, bkv_ref,
                           wo_ref, bo_ref,
                           out_ref,
                           *, d_pad: int, s_actual: int, s_pad: int):
    img = img_ref[...]                       # (tm, Dp)   compute dtype
    txt = txt_ref[...]                       # (Sp, Dcp)  compute dtype

    # Projections.  Weights are already (in, out): plain x @ W, no transpose.
    # K and V are fused into one wide matmul and split on a lane boundary.
    q = jnp.dot(img, wq_ref[...], preferred_element_type=jnp.float32) + bq_ref[...]
    kv = jnp.dot(txt, wkv_ref[...], preferred_element_type=jnp.float32) + bkv_ref[...]
    k = kv[:, :d_pad]                        # (Sp, Dp) f32
    v = kv[:, d_pad:]                        # (Sp, Dp) f32

    # Scores: contract the last dim of q with the last dim of k -> (tm, Sp),
    # MXU-friendly, no in-kernel transpose of k.
    s = lax.dot_general(q, k,
                        dimension_numbers=(((1,), (1,)), ((), ())),
                        preferred_element_type=jnp.float32)

    # Mask padded key positions so no softmax mass leaks into padding.
    if s_pad > s_actual:
        col = lax.broadcasted_iota(jnp.int32, s.shape, 1)
        s = jnp.where(col < s_actual, s, jnp.float32(-1e30))

    # Softmax over the key axis (PyTorch dim=1), f32 throughout.
    m = jnp.max(s, axis=1, keepdims=True)
    e = jnp.exp(s - m)
    denom = jnp.sum(e, axis=1, keepdims=True)
    attn = e * pl.reciprocal(denom, approx=True)      # EUP vrcp slot

    # Weighted sum of values + output projection.
    x = jnp.dot(attn.astype(v.dtype), v, preferred_element_type=jnp.float32)
    out = jnp.dot(x.astype(wo_ref.dtype), wo_ref[...],
                  preferred_element_type=jnp.float32) + bo_ref[...]

    out_ref[...] = out.astype(out_ref.dtype)


def cross_attention(img, text_embedding, params, *,
                    tm: int = 256, compute_dtype=jnp.float32):
    """Fused CrossAttention forward.  img: (M, D_img), text: (S, D_txt)."""
    M, d_img = img.shape
    S, d_txt = text_embedding.shape

    Dp = _round_up(d_img, 128)       # lane-dense feature dims
    Dcp = _round_up(d_txt, 128)
    Sp = _round_up(S, 8)
    tm = min(tm, _round_up(M, 8))
    Mp = _round_up(_round_up(M, 8), tm)

    def pad2(a, r, c):
        return jnp.pad(a, ((0, r - a.shape[0]), (0, c - a.shape[1])))

    # Trace-time weight prep (runs once outside the kernel): transpose to
    # (in, out), zero-pad to lane width, fuse K/V, optional bf16 cast.
    wq_t = pad2(params["wq"].T, Dp, Dp).astype(compute_dtype)
    wo_t = pad2(params["wo"].T, Dp, Dp).astype(compute_dtype)
    wkv_t = jnp.concatenate(
        [pad2(params["wk"].T, Dcp, Dp), pad2(params["wv"].T, Dcp, Dp)],
        axis=1).astype(compute_dtype)                                   # (Dcp, 2*Dp)

    bq = pad2(params["bq"], 1, Dp).astype(jnp.float32)
    bo = pad2(params["bo"], 1, Dp).astype(jnp.float32)
    bkv = jnp.concatenate(
        [pad2(params["bk"], 1, Dp), pad2(params["bv"], 1, Dp)],
        axis=1).astype(jnp.float32)                                     # (1, 2*Dp)

    img_p = pad2(img, Mp, Dp).astype(compute_dtype)
    txt_p = pad2(text_embedding, Sp, Dcp).astype(compute_dtype)

    grid = (Mp // tm,)

    kernel = functools.partial(cross_attention_kernel,
                               d_pad=Dp, s_actual=S, s_pad=Sp)

    # Advisory cost estimate (whole call).
    flops = (2 * Mp * Dp * Dp            # q projection
             + 2 * Sp * Dcp * (2 * Dp)   # fused kv projection
             + 2 * Mp * Sp * Dp * 2      # scores + attn @ v
             + 2 * Mp * Dp * Dp)         # output projection
    operands = (img_p, txt_p, wq_t, bq, wkv_t, bkv, wo_t, bo)
    bytes_accessed = sum(int(a.size) * a.dtype.itemsize for a in operands) + Mp * Dp * 4

    out_p = pl.pallas_call(
        kernel,
        out_shape=jax.ShapeDtypeStruct((Mp, Dp), jnp.float32),
        grid_spec=pltpu.PrefetchScalarGridSpec(
            num_scalar_prefetch=0,
            grid=grid,
            in_specs=[
                pl.BlockSpec((tm, Dp), lambda i: (i, 0)),          # img tile
                pl.BlockSpec((Sp, Dcp), lambda i: (0, 0)),         # text (resident)
                pl.BlockSpec((Dp, Dp), lambda i: (0, 0)),          # Wq^T
                pl.BlockSpec((1, Dp), lambda i: (0, 0)),           # bq
                pl.BlockSpec((Dcp, 2 * Dp), lambda i: (0, 0)),     # [Wk;Wv]^T
                pl.BlockSpec((1, 2 * Dp), lambda i: (0, 0)),       # [bk;bv]
                pl.BlockSpec((Dp, Dp), lambda i: (0, 0)),          # Wo^T
                pl.BlockSpec((1, Dp), lambda i: (0, 0)),           # bo
            ],
            out_specs=pl.BlockSpec((tm, Dp), lambda i: (i, 0)),
        ),
        compiler_params=pltpu.CompilerParams(
            dimension_semantics=("parallel",),
            vmem_limit_bytes=64 * 1024 * 1024,
        ),
        cost_estimate=pl.CostEstimate(
            flops=flops,
            transcendentals=Mp * Sp,
            bytes_accessed=bytes_accessed,
        ),
    )(*operands)

    return out_p[:M, :d_img]


def init_params(key, image_embedding_shape, content_embedding_shape):
    """Deterministic init mimicking nn.Linear's uniform(-1/sqrt(fan_in), ...)."""
    D, Dc = image_embedding_shape, content_embedding_shape
    keys = jax.random.split(key, 8)

    def lin(kw, kb, out_f, in_f):
        bound = 1.0 / jnp.sqrt(in_f)
        w = jax.random.uniform(kw, (out_f, in_f), jnp.float32, -bound, bound)
        b = jax.random.uniform(kb, (1, out_f), jnp.float32, -bound, bound)
        return w, b

    wq, bq = lin(keys[0], keys[1], D, D)
    wk, bk = lin(keys[2], keys[3], D, Dc)
    wv, bv = lin(keys[4], keys[5], D, Dc)
    wo, bo = lin(keys[6], keys[7], D, D)
    return dict(wq=wq, bq=bq, wk=wk, bk=bk, wv=wv, bv=bv, wo=wo, bo=bo)


def cross_attention_ref(img, txt, p):
    q = img @ p["wq"].T + p["bq"]
    k = txt @ p["wk"].T + p["bk"]
    v = txt @ p["wv"].T + p["bv"]
    attn = jax.nn.softmax(q @ k.T, axis=1)
    return attn @ v @ p["wo"].T + p["bo"]


if __name__ == "__main__":
    # Small shapes consistent with the module's forward:
    #   img:  (M, image_embedding_shape)   = (20, 32)
    #   text: (S, content_embedding_shape) = (10, 64)
    # M, S, D_img, D_txt are all non-multiples of the lane/sublane widths so the
    # padding + key-masking + output-slicing paths are exercised.
    image_embedding_shape = 32
    content_embedding_shape = 64
    M, S = 20, 10

    key = jax.random.PRNGKey(0)
    k_img, k_txt, k_par = jax.random.split(key, 3)
    img = jax.random.normal(k_img, (M, image_embedding_shape), jnp.float32)
    text_embedding = jax.random.normal(k_txt, (S, content_embedding_shape), jnp.float32)
    params = init_params(k_par, image_embedding_shape, content_embedding_shape)

    # tm=8 so the toy problem still runs a multi-step grid (grid=(3,)).
    out = cross_attention(img, text_embedding, params, tm=8,
                          compute_dtype=jnp.float32)
    out = jax.block_until_ready(out)

    ref = cross_attention_ref(img, text_embedding, params)
    assert out.shape == (M, image_embedding_shape)
    # Tolerance accounts for pl.reciprocal(approx=True) in the softmax (~1e-3 rel).
    assert jnp.allclose(out, ref, atol=1e-2, rtol=1e-2), \
        f"max abs err {jnp.max(jnp.abs(out - ref))}"

    print("KERNEL_OK")
</pallas_src>

<mosaic_0001>
module attributes {stable_mosaic.version = 11 : i64} {
  func.func @cross_attention_kernel(%arg0: i32, %arg1: memref<8x128xf32, #tpu.memory_space<vmem>>, %arg2: memref<16x128xf32, #tpu.memory_space<vmem>>, %arg3: memref<128x128xf32, #tpu.memory_space<vmem>>, %arg4: memref<1x128xf32, #tpu.memory_space<vmem>>, %arg5: memref<128x256xf32, #tpu.memory_space<vmem>>, %arg6: memref<1x256xf32, #tpu.memory_space<vmem>>, %arg7: memref<128x128xf32, #tpu.memory_space<vmem>>, %arg8: memref<1x128xf32, #tpu.memory_space<vmem>>, %arg9: memref<8x128xf32, #tpu.memory_space<vmem>>) attributes {dimension_semantics = [#tpu.dimension_semantics<parallel>], iteration_bounds = array<i64: 3>, scalar_prefetch = 0 : i64, scratch_operands = 0 : i64, tpu.core_type = #tpu.core_type<tc>, window_params = [{transform_indices = @transform_0, window_bounds = array<i64: 8, 128>}, {pipeline_mode = #tpu.pipeline_mode<synchronous>, transform_indices = @transform_1, window_bounds = array<i64: 16, 128>}, {pipeline_mode = #tpu.pipeline_mode<synchronous>, transform_indices = @transform_2, window_bounds = array<i64: 128, 128>}, {pipeline_mode = #tpu.pipeline_mode<synchronous>, transform_indices = @transform_3, window_bounds = array<i64: 1, 128>}, {pipeline_mode = #tpu.pipeline_mode<synchronous>, transform_indices = @transform_4, window_bounds = array<i64: 128, 256>}, {pipeline_mode = #tpu.pipeline_mode<synchronous>, transform_indices = @transform_5, window_bounds = array<i64: 1, 256>}, {pipeline_mode = #tpu.pipeline_mode<synchronous>, transform_indices = @transform_6, window_bounds = array<i64: 128, 128>}, {pipeline_mode = #tpu.pipeline_mode<synchronous>, transform_indices = @transform_7, window_bounds = array<i64: 1, 128>}, {transform_indices = @transform_8, window_bounds = array<i64: 8, 128>}]} {
    %c0 = arith.constant 0 : index
    %c0_0 = arith.constant 0 : index
    %0 = vector.load %arg1[%c0, %c0_0] : memref<8x128xf32, #tpu.memory_space<vmem>>, vector<8x128xf32>
    %c0_1 = arith.constant 0 : index
    %c0_2 = arith.constant 0 : index
    %1 = vector.load %arg2[%c0_1, %c0_2] : memref<16x128xf32, #tpu.memory_space<vmem>>, vector<16x128xf32>
    %c0_3 = arith.constant 0 : index
    %c0_4 = arith.constant 0 : index
    %2 = vector.load %arg3[%c0_3, %c0_4] : memref<128x128xf32, #tpu.memory_space<vmem>>, vector<128x128xf32>
    %cst = arith.constant dense<0.000000e+00> : vector<8x128xf32>
    %3 = tpu.matmul %0, %2, %cst {dimension_numbers = #tpu.dot_dimension_numbers<[1], [0], [0], [1], [0, 0, 1, 1], [], []>} : vector<8x128xf32>, vector<128x128xf32>, vector<8x128xf32> -> vector<8x128xf32>
    %c0_5 = arith.constant 0 : index
    %c0_6 = arith.constant 0 : index
    %4 = vector.load %arg4[%c0_5, %c0_6] : memref<1x128xf32, #tpu.memory_space<vmem>>, vector<1x128xf32>
    %5 = vector.broadcast %4 : vector<1x128xf32> to vector<8x128xf32>
    %6 = arith.addf %3, %5 : vector<8x128xf32>
    %c0_7 = arith.constant 0 : index
    %c0_8 = arith.constant 0 : index
    %7 = vector.load %arg5[%c0_7, %c0_8] : memref<128x256xf32, #tpu.memory_space<vmem>>, vector<128x256xf32>
    %cst_9 = arith.constant dense<0.000000e+00> : vector<16x256xf32>
    %8 = tpu.matmul %1, %7, %cst_9 {dimension_numbers = #tpu.dot_dimension_numbers<[1], [0], [0], [1], [0, 0, 1, 1], [], []>} : vector<16x128xf32>, vector<128x256xf32>, vector<16x256xf32> -> vector<16x256xf32>
    %c0_10 = arith.constant 0 : index
    %c0_11 = arith.constant 0 : index
    %9 = vector.load %arg6[%c0_10, %c0_11] : memref<1x256xf32, #tpu.memory_space<vmem>>, vector<1x256xf32>
    %10 = vector.broadcast %9 : vector<1x256xf32> to vector<16x256xf32>
    %11 = arith.addf %8, %10 : vector<16x256xf32>
    %12 = vector.extract_strided_slice %11 {offsets = [0, 0], sizes = [16, 128], strides = [1, 1]} : vector<16x256xf32> to vector<16x128xf32>
    %13 = vector.extract_strided_slice %11 {offsets = [0, 128], sizes = [16, 128], strides = [1, 1]} : vector<16x256xf32> to vector<16x128xf32>
    %cst_12 = arith.constant dense<0.000000e+00> : vector<8x16xf32>
    %14 = tpu.matmul %6, %12, %cst_12 {dimension_numbers = #tpu.dot_dimension_numbers<[1], [1], [0], [0], [0, 0, 1, 0], [], []>} : vector<8x128xf32>, vector<16x128xf32>, vector<8x16xf32> -> vector<8x16xf32>
    %15 = tpu.iota {dimensions = array<i32: 1>} : vector<8x16xi32>
    %c10_i32 = arith.constant 10 : i32
    %16 = vector.broadcast %c10_i32 : i32 to vector<8x16xi32>
    %17 = arith.cmpi slt, %15, %16 : vector<8x16xi32>
    %cst_13 = arith.constant -1.000000e+30 : f32
    %18 = vector.broadcast %cst_13 : f32 to vector<8x16xf32>
    %19 = arith.select %17, %14, %18 : vector<8x16xi1>, vector<8x16xf32>
    %cst_14 = arith.constant dense<0xFF800000> : vector<8xf32>
    %20 = vector.multi_reduction <maximumf>, %19, %cst_14 [1] : vector<8x16xf32> to vector<8xf32>
    %21 = vector.shape_cast %20 : vector<8xf32> to vector<8x1xf32>
    %22 = vector.broadcast %21 : vector<8x1xf32> to vector<8x16xf32>
    %23 = arith.subf %19, %22 : vector<8x16xf32>
    %24 = math.exp %23 : vector<8x16xf32>
    %cst_15 = arith.constant dense<0.000000e+00> : vector<8xf32>
    %25 = vector.multi_reduction <add>, %24, %cst_15 [1] : vector<8x16xf32> to vector<8xf32>
    %26 = vector.shape_cast %25 : vector<8xf32> to vector<8x1xf32>
    %27 = tpu.reciprocal %26 {approx = true} : vector<8x1xf32> -> vector<8x1xf32>
    %28 = vector.broadcast %27 : vector<8x1xf32> to vector<8x16xf32>
    %29 = arith.mulf %24, %28 : vector<8x16xf32>
    %cst_16 = arith.constant dense<0.000000e+00> : vector<8x128xf32>
    %30 = tpu.matmul %29, %13, %cst_16 {dimension_numbers = #tpu.dot_dimension_numbers<[1], [0], [0], [1], [0, 0, 1, 1], [], []>} : vector<8x16xf32>, vector<16x128xf32>, vector<8x128xf32> -> vector<8x128xf32>
    %c0_17 = arith.constant 0 : index
    %c0_18 = arith.constant 0 : index
    %31 = vector.load %arg7[%c0_17, %c0_18] : memref<128x128xf32, #tpu.memory_space<vmem>>, vector<128x128xf32>
    %cst_19 = arith.constant dense<0.000000e+00> : vector<8x128xf32>
    %32 = tpu.matmul %30, %31, %cst_19 {dimension_numbers = #tpu.dot_dimension_numbers<[1], [0], [0], [1], [0, 0, 1, 1], [], []>} : vector<8x128xf32>, vector<128x128xf32>, vector<8x128xf32> -> vector<8x128xf32>
    %c0_20 = arith.constant 0 : index
    %c0_21 = arith.constant 0 : index
    %33 = vector.load %arg8[%c0_20, %c0_21] : memref<1x128xf32, #tpu.memory_space<vmem>>, vector<1x128xf32>
    %34 = vector.broadcast %33 : vector<1x128xf32> to vector<8x128xf32>
    %35 = arith.addf %32, %34 : vector<8x128xf32>
    %c0_22 = arith.constant 0 : index
    %c0_23 = arith.constant 0 : index
    %36 = vector.load %arg9[%c0_22, %c0_23] : memref<8x128xf32, #tpu.memory_space<vmem>>, vector<8x128xf32>
    tpu.vector_store %arg9[%c0_22, %c0_23], %35 {strides = array<i32>} : memref<8x128xf32, #tpu.memory_space<vmem>>, vector<8x128xf32>,
    return
  }
  func.func @transform_0(%arg0: i32) -> (i32, i32) {
    %c0_i32 = arith.constant 0 : i32
    %c0_i32_0 = arith.constant 0 : i32
    return %arg0, %c0_i32 : i32, i32
  }
  func.func @transform_1(%arg0: i32) -> (i32, i32) {
    %c0_i32 = arith.constant 0 : i32
    %c0_i32_0 = arith.constant 0 : i32
    %c0_i32_1 = arith.constant 0 : i32
    return %c0_i32, %c0_i32_0 : i32, i32
  }
  func.func @transform_2(%arg0: i32) -> (i32, i32) {
    %c0_i32 = arith.constant 0 : i32
    %c0_i32_0 = arith.constant 0 : i32
    %c0_i32_1 = arith.constant 0 : i32
    return %c0_i32, %c0_i32_0 : i32, i32
  }
  func.func @transform_3(%arg0: i32) -> (i32, i32) {
    %c0_i32 = arith.constant 0 : i32
    %c0_i32_0 = arith.constant 0 : i32
    %c0_i32_1 = arith.constant 0 : i32
    return %c0_i32, %c0_i32_0 : i32, i32
  }
  func.func @transform_4(%arg0: i32) -> (i32, i32) {
    %c0_i32 = arith.constant 0 : i32
    %c0_i32_0 = arith.constant 0 : i32
    %c0_i32_1 = arith.constant 0 : i32
    return %c0_i32, %c0_i32_0 : i32, i32
  }
  func.func @transform_5(%arg0: i32) -> (i32, i32) {
    %c0_i32 = arith.constant 0 : i32
    %c0_i32_0 = arith.constant 0 : i32
    %c0_i32_1 = arith.constant 0 : i32
    return %c0_i32, %c0_i32_0 : i32, i32
  }
  func.func @transform_6(%arg0: i32) -> (i32, i32) {
    %c0_i32 = arith.constant 0 : i32
    %c0_i32_0 = arith.constant 0 : i32
    %c0_i32_1 = arith.constant 0 : i32
    return %c0_i32, %c0_i32_0 : i32, i32
  }
  func.func @transform_7(%arg0: i32) -> (i32, i32) {
    %c0_i32 = arith.constant 0 : i32
    %c0_i32_0 = arith.constant 0 : i32
    %c0_i32_1 = arith.constant 0 : i32
    return %c0_i32, %c0_i32_0 : i32, i32
  }
  func.func @transform_8(%arg0: i32) -> (i32, i32) {
    %c0_i32 = arith.constant 0 : i32
    %c0_i32_0 = arith.constant 0 : i32
    return %arg0, %c0_i32 : i32, i32
  }
}

</mosaic_0001>

<bundles_post_ra>
// kernel: tpu_custom_call.1
= control target key start
LH: loop header
LB: loop body
LE: loop exit
PB: predicated region body
PF: predicated region fallthrough
CT: control target
= control target key end

     0   :  { %s1755_s0 = inlined_call_operand.hbm [shape: f32[24,128], index: 0, kind: input, shape index: {}]   ;;  %s1756_s1 = inlined_call_operand.hbm [shape: f32[16,128], index: 1, kind: input, shape index: {}]   ;;  %s1757_s2 = inlined_call_operand.hbm [shape: f32[128,128], index: 2, kind: input, shape index: {}]   ;;  %s1758_s3 = inlined_call_operand.vmem [shape: f32[1,128], index: 3, kind: input, shape index: {}]   ;;  %s1759_s4 = inlined_call_operand.hbm [shape: f32[128,256], index: 4, kind: input, shape index: {}]   ;;  %s1760_s5 = inlined_call_operand.vmem [shape: f32[1,256], index: 5, kind: input, shape index: {}]   ;;  %s1761_s6 = inlined_call_operand.hbm [shape: f32[128,128], index: 6, kind: input, shape index: {}]   ;;  %s1762_s7 = inlined_call_operand.vmem [shape: f32[1,128], index: 7, kind: input, shape index: {}]   ;;  %s1763_s8 = inlined_call_operand.hbm [shape: f32[24,128], index: 8, kind: output, shape index: {}]  }
   0x1   :  { %1768 = sst [smem:[#allocation16_spill]] %s1756_s1 }
   0x2   :  { %1769 = sst [smem:[#allocation17_spill]] %s1757_s2 }
   0x3   :  { %1770 = sst [smem:[#allocation18_spill]] %s1759_s4 }
   0x4   :  { %13 = vsyncpa [#allocation3], 0 }
   0x5   :  { %15 = vsyncpa [#allocation3 + $0x1], 0 }
   0x6   :  { %16 = vsyncpa [#allocation6], 0 }
   0x7   :  { %17 = vsyncpa [#allocation9], 0 }
   0x8   :  { %18 = vsyncpa [#allocation4], 0 }
   0x9   :  { %20 = vsyncpa [#allocation4 + $0x1], 0  ;;  %s1478_s27 = smov 0   ;;  %s1480_s28 = smov 0  }
   0xa   :  { %s1482_s29 = smov 0   ;;  %s1484_s30 = smov 0  }
   0xb LB: > { %s1421_s9 = smov [#allocation5]   ;;  %s1499_s11 = sadd.s32 4294967295, %s1419_s30   ;;  %s1419_s30 = sphi %s1484_s30, %s1792_s30   ;;  %s1415_s29 = sphi %s1482_s29, %s1791_s29   ;;  %s1411_s28 = sphi %s1480_s28, %s1790_s28   ;;  %s1407_s27 = sphi %s1478_s27, %s1789_s27  }
   0xc   : > { %s242_s10 = sshll.u32 %s1421_s9, 4  ;;  %p972_p0 = scmp.ge.s32.totalorder %s1419_s30, 1  ;;  %s243_s10 = int_to_ptr.vmem [resolvable:$true] %s242_s10 }
   0xd   : > { %p1764_p1 = scmp.eq.s32.totalorder %s1499_s11, 0  ;;  %p230_p2 = scmp.lt.s32.totalorder %s1419_s30, 4 }
   0xe   : > { %s1422_s13 = smov [#allocation8]   ;;  %s1423_s16 = smov [#allocation7]  }
   0xf   : > { %p1504_p3 = pnand %p972_p0, %p230_p2  ;;  %s271_s14 = sshll.u32 %s1422_s13, 4  ;;  %s1516_s14 = int_to_ptr.vmem [resolvable:$true] %s271_s14 }
  0x10   : > { %s1518_s17 = sshll.u32 %s1423_s16, 4  ;;  %s1226_s18 = scalar_lea.vmem %s243_s10, 256  ;;  %s256_s17 = int_to_ptr.vmem [resolvable:$true] %s1518_s17 }
  0x11   : > { %s1771_s12 = scalar_select %p1504_p3, 1, 0 }
  0x12   : > { %p1138_p4 = pneg %p1504_p3  ;;  %p1227_p7 = scmp.ne.s32.totalorder %s243_s10, %s1226_s18 }
  0x13   : > { %p1234_p10 = scmp.lt.s32.totalorder %s243_s10, %s243_s10  ;;  %p1235_p11 = scmp.lt.s32.totalorder %s1226_s18, %s1226_s18 }
  0x14   : > { %p1512_p5 = pnand %p1138_p4, %p1764_p1 }
  0x15   : > { %p1236_p12 = por %p1235_p11, %p1234_p10 }
  0x16   : > { %p1217_p6 = pneg %p1512_p5 }
  0x18   : > { %p1229_p8 = pnand %p1227_p7, %p1217_p6 }
  0x1a   : > { %p1230_p9 = pneg %p1229_p8 }
  0x1c   : > { %p1237_p13 = pnand %p1236_p12, %p1230_p9 }
  0x1e   : > { %1240 = shalt.err (!%p1237_p13)
}
  0x1f   : > { %s1424_s19 = smov 128   ;;  %s1425_s20 = smov 8  }
  0x20   : > { %s1773_s1 = sld [smem:[#allocation16_spill]]  ;;  %s1252_s23 = scalar_lea.vmem %s1516_s14, 4096 }
  0x21   : > { %p1253_p0 = scmp.ne.s32.totalorder %s1516_s14, %s1252_s23  ;;  %p1260_p7 = scmp.lt.s32.totalorder %s1516_s14, %s1516_s14 }
  0x22   : > { %p1261_p8 = scmp.lt.s32.totalorder %s1252_s23, %s1252_s23 }
  0x23   : > { %p1255_p2 = pnand %p1253_p0, %p1217_p6 }
  0x24   : > { %p1262_p9 = por %p1261_p8, %p1260_p7 }
  0x25   : > { %p1256_p4 = pneg %p1255_p2 }
  0x26   : > { %1141 = dma.hbm_to_vmem [thread:$0]  (!%p1512_p5), %s1773_s1, 256, %s243_s10, [#allocation6], %s1424_s19, %s1424_s19, %s1425_s20  }
  0x27   : > { %p1263_p10 = pnand %p1262_p9, %p1256_p4 }
  0x29   : > { %1266 = shalt.err (!%p1263_p10)
}
  0x2a   : > { %s1426_s24 = smov 256   ;;  %s1427_s25 = smov 16  }
  0x2b   : > { %s1774_s4 = sld [smem:[#allocation18_spill]]  ;;  %s1278_s10 = scalar_lea.vmem %s256_s17, 2048 }
  0x2c   : > { %p1279_p11 = scmp.ne.s32.totalorder %s256_s17, %s1278_s10  ;;  %p1286_p0 = scmp.lt.s32.totalorder %s256_s17, %s256_s17 }
  0x2d   : > { %p1287_p2 = scmp.lt.s32.totalorder %s1278_s10, %s1278_s10 }
  0x2e   : > { %p1281_p12 = pnand %p1279_p11, %p1217_p6 }
  0x2f   : > { %p1288_p4 = por %p1287_p2, %p1286_p0 }
  0x30   : > { %p1282_p13 = pneg %p1281_p12 }
  0x31   : > { %1147 = dma.hbm_to_vmem [thread:$0]  (!%p1512_p5), %s1774_s4, 4096, %s1516_s14, [#allocation9], %s1426_s24, %s1426_s24, %s1427_s25  }
  0x32   : > { %p1289_p7 = pnand %p1288_p4, %p1282_p13 }
  0x34   : > { %1292 = shalt.err (!%p1289_p7)
}
  0x35   : > { %s1775_s2 = sld [smem:[#allocation17_spill]]  ;;  %s1428_s14 = smov [#allocation10]  }
  0x36   : > { %s287_s18 = sshll.u32 %s1428_s14, 4  ;;  %s288_s18 = int_to_ptr.vmem [resolvable:$true] %s287_s18 }
  0x37   : > { %s1304_s21 = scalar_lea.vmem %s288_s18, 2048  ;;  %p1312_p11 = scmp.lt.s32.totalorder %s288_s18, %s288_s18 }
  0x38   : > { %p1305_p8 = scmp.ne.s32.totalorder %s288_s18, %s1304_s21  ;;  %p1313_p12 = scmp.lt.s32.totalorder %s1304_s21, %s1304_s21 }
  0x3a   : > { %p1307_p9 = pnand %p1305_p8, %p1217_p6  ;;  %p1314_p13 = por %p1313_p12, %p1312_p11 }
  0x3b   : > { %1144 = dma.hbm_to_vmem [thread:$0]  (!%p1512_p5), %s1775_s2, 2048, %s256_s17, [#allocation6], %s1424_s19, %s1424_s19, %s1425_s20  }
  0x3c   : > { %p1308_p10 = pneg %p1307_p9 }
  0x3e   : > { %p1315_p0 = pnand %p1314_p13, %p1308_p10 }
  0x40   : > { %1318 = shalt.err (!%p1315_p0)
}
  0x41   : > { %1150 = dma.hbm_to_vmem [thread:$0]  (!%p1512_p5), %s1761_s6, 2048, %s288_s18, [#allocation9], %s1424_s19, %s1424_s19, %s1425_s20  }
  0x42   : > { %s971_s15 = sadd.s32 4294967294, %s1419_s30   ;;  %s1571_s23 = sadd.s32 1, %s1419_s30  }
  0x43   : > { %s30_s24 = ssub.s32 %s1419_s30, %s1571_s23  ;;  %s33_s25 = sadd.s32 1, %s1415_s29 }
  0x44   : > { %p31_p6 = scmp.eq.s32.totalorder %s30_s24, 0  ;;  %p40_p2 = scmp.ne.s32.totalorder %s1415_s29, %s1411_s28 }
  0x45   : > { %p41_p4 = scmp.eq.s32.totalorder %s1419_s30, 0  ;;  %p46_p7 = scmp.ne.s32.totalorder %s1411_s28, %s1407_s27 }
  0x46   : > { %s1582_s26 = scalar_select %p31_p6, %s1415_s29, %s33_s25  }
  0x47   : > { %p1584_p8 = por %p41_p4, %p40_p2  ;;  %p1590_p5 = por %p1764_p1, %p46_p7 }
  0x48   : > { %p217_p9 = scmp.eq.s32.totalorder %s1499_s11, 2  ;;  %p223_p10 = scmp.eq.s32.totalorder %s971_s15, 2 }
  0x49   : > { %s1777_s19 = scalar_select %p1590_p5, 1, 0 }
  0x4a   : > { %p1163_p11 = scmp.lt.s32.totalorder %s1419_s30, 3  ;;  %s304_s20 = sand.u32 1, %s1415_s29  }
  0x4b   : > { %p1597_p12 = por %p217_p9, %p40_p2  ;;  %p1601_p13 = por %p223_p10, %p46_p7 }
  0x4c   : > { %s978_s16 = sshll.u32 %s304_s20, 3  ;;  %s979_s14 = sshll.u32 %s1419_s30, 7 }
  0x4d   : > { %s1778_s10 = scalar_select %p1597_p12, 1, 0 }
  0x4e   : > { %s1779_s13 = scalar_select %p1601_p13, 1, 0 }
  0x4f   : > { %s1609_s17 = scalar_lea.hbm %s1755_s0, %s979_s14  ;;  %s308_s22 = scalar_lea.vmem [#allocation2], %s978_s16 }
  0x50   : > { %s315_s15 = sshll.u32 %s308_s22, 4  ;;  %p1613_p0 = pnand %p1163_p11, %p1584_p8  ;;  %s316_s15 = int_to_ptr.vmem [resolvable:$true] %s315_s15 }
  0x51   : > { %s305_s25 = scalar_lea.sflag [#allocation3], %s304_s20  ;;  %s1319_s1 = scalar_lea.hbm %s1609_s17, 128 }
  0x52   : > { %p1320_p6 = scmp.ne.s32.totalorder %s1609_s17, %s1319_s1  ;;  %p1321_p2 = pneg %p1613_p0 }
  0x53   : > { %s1324_s21 = scalar_lea.hbm %s1755_s0, 384  ;;  %p1325_p9 = scmp.lt.s32.totalorder %s1609_s17, %s1755_s0 }
  0x54   : > { %p1322_p4 = pnand %p1321_p2, %p1320_p6  ;;  %p1326_p8 = scmp.lt.s32.totalorder %s1324_s21, %s1319_s1 }
  0x56   : > { %p1323_p7 = pneg %p1322_p4  ;;  %p1327_p10 = por %p1326_p8, %p1325_p9 }
  0x58   : > { %p1328_p11 = pnand %p1327_p10, %p1323_p7 }
  0x5a   : > { %1331 = shalt.err (!%p1328_p11)
}
  0x5b   : > { %s1332_s9 = scalar_lea.vmem %s316_s15, 128  ;;  %s1429_s20 = smov [#allocation2]  }
  0x5c   : > { %p1333_p1 = scmp.ne.s32.totalorder %s316_s15, %s1332_s9  ;;  %s1337_s2 = sshll.u32 %s1429_s20, 4  ;;  %s1338_s2 = int_to_ptr.vmem [resolvable:$false] %s1337_s2 }
  0x5d   : > { %s1339_s4 = scalar_lea.vmem %s1338_s2, 256  ;;  %p1340_p6 = scmp.lt.s32.totalorder %s316_s15, %s1338_s2 }
  0x5e   : > { %p1335_p13 = pnand %p1333_p1, %p1321_p2  ;;  %p1341_p4 = scmp.lt.s32.totalorder %s1339_s4, %s1332_s9 }
  0x60   : > { %p1336_p12 = pneg %p1335_p13  ;;  %p1342_p5 = por %p1341_p4, %p1340_p6 }
  0x62   : > { %p1343_p3 = pnand %p1342_p5, %p1336_p12 }
  0x64   : > { %1346 = shalt.err (!%p1343_p3)
}
  0x65   : > { %1154 = dma.hbm_to_vmem [thread:$0]  (!%p1613_p0), %s1609_s17, 128, %s316_s15, %s305_s25  }
  0x66   : > { %p1781_p7 = scmp.ne.s32.totalorder %s1771_s12, 0 }
  0x67   : > { %s1634_s1 = sand.u32 (!%p1781_p7), 1, %s1411_s28   ;;  %p1782_p1 = scmp.ne.s32.totalorder (!%p1781_p7), %s1777_s19, 0 }
  0x68   : > { %324 = sbr.rel (%p1781_p7) target bundleno = 1263 (0x4ef), region = 52  ;;  %s981_s14 = sshll.u32 (!%p1781_p7), %s1634_s1, 3 }
  0x69   : > { %s327_s2 = scalar_lea.sflag (!%p1781_p7), [#allocation3], %s1634_s1  ;;  %s1640_s4 = scalar_lea.vmem (!%p1781_p7), [#allocation2], %s981_s14 }
  0x6d   : > { %1390 = dma.done.wait (%p1782_p1), %s327_s2, 128  }
  0x6e   : > { %1392 = vsyncadd (%p1782_p1), %s327_s2, 4294967168  ;;  %p1783_p3 = scmp.eq.s32.totalorder %s1499_s11, 0 }
  0x70   : > { %1394 = dma.done.wait (%p1783_p3), [#allocation6], 2304   ;;  %p1784_p5 = pmov %p1783_p3 }
  0x71   : > { %p1785_p12 = pmov %p1783_p3 }
  0x72   : > { %1396 = vsyncadd (%p1784_p5), [#allocation6], 4294964992 }
  0x73   : > { %1398 = dma.done.wait (%p1785_p12), [#allocation9], 6144   ;;  %p1786_p13 = pmov %p1783_p3 }
  0x74   : > { %v1430_v0 = vmov 0.0   ;;  %vm1431_vm0 = vmmov 0   ;;  %v506_v1 = vld [vmem:[#allocation8 + $0xf8] sm:$0xff]  ;;  %v505_v2 = vld [vmem:[#allocation8 + $0xf0] sm:$0xff]  ;;  %v504_v3 = vld [vmem:[#allocation8 + $0xe8] sm:$0xff]  ;;  %v509_v52 = vlaneseq  ;;  %vm670_vm2 = vcmask 130048  }
  0x75   : > { %1400 = vsyncadd (%p1786_p13), [#allocation9], 4294961152  ;;  %1034 = vmatprep.subr.mxu0 %v1430_v0  ;;  %583 = vmatprep.mubr.f32.mxu1 %v1430_v0  ;;  %v503_v4 = vld [vmem:[#allocation8 + $0xe0] sm:$0xff]  ;;  %v502_v5 = vld [vmem:[#allocation8 + $0xd8] sm:$0xff]  ;;  %s991_s18 = sshll.u32 %s1499_s11, 7  ;;  %s378_s21 = scalar_lea.vmem [#allocation11], %s981_s14 }
  0x76   : > { %1066 = vmatprep.mubr.msk.f32.mxu0 %vm1431_vm0, %v1430_v0  ;;  %519 = vmatprep.subr.mxu1 %v506_v1  ;;  %v501_v6 = vld [vmem:[#allocation8 + $0xd0] sm:$0xff]  ;;  %v397_v7 = vld [vmem:[#allocation7 + $0x78] sm:$0xff]  ;;  %v500_v8 = vld [vmem:[#allocation8 + $0xc8] sm:$0xff]  ;;  %v510_v53 = vshrl.u32 %v509_v52, 7  ;;  %s863_s16 = sshll.u32 %s378_s21, 4  ;;  %s1719_s20 = scalar_lea.hbm %s1763_s8, %s991_s18  ;;  %s864_s16 = int_to_ptr.vmem [resolvable:$true] %s863_s16 }
  0x77   : > { %520 = vmatpush1.msra.mxu1 %v505_v2  ;;  %1035 = vmatpush3.msra.mxu0 %v397_v7  ;;  %v396_v9 = vld [vmem:[#allocation7 + $0x70] sm:$0xff]  ;;  %v499_v10 = vld [vmem:[#allocation8 + $0xc0] sm:$0xff]  ;;  %v395_v11 = vld [vmem:[#allocation7 + $0x68] sm:$0xff]  ;;  %s850_s2 = scalar_lea.sflag [#allocation4], %s1634_s1  ;;  %p1787_p2 = scmp.ne.s32.totalorder %s1778_s10, 0 }
  0x78   : > { %521 = vmatprep.subr.mxu1 %v504_v3  ;;  %1036 = vmatprep.subr.mxu0 %v1430_v0  ;;  %v498_v12 = vld [vmem:[#allocation8 + $0xb8] sm:$0xff]  ;;  %v497_v13 = vld [vmem:[#allocation8 + $0xb0] sm:$0xff]  ;;  %v394_v14 = vld [vmem:[#allocation7 + $0x60] sm:$0xff]  ;;  %v511_v54 = vsub.s32 0, %v510_v53  ;;  %v515_v63 = vsub.s32 1, %v510_v53  ;;  %s1432_s11 = smov [#allocation11]  }
  0x79   : > { %522 = vmatpush1.msra.mxu1 %v503_v4  ;;  %1037 = vmatpush3.msra.mxu0 %v396_v9  ;;  %v496_v15 = vld [vmem:[#allocation8 + $0xa8] sm:$0xff]  ;;  %v495_v16 = vld [vmem:[#allocation8 + $0xa0] sm:$0xff]  ;;  %v393_v17 = vld [vmem:[#allocation7 + $0x58] sm:$0xff]  ;;  %s1351_s12 = sshll.u32 %s1432_s11, 4  ;;  %s1352_s12 = int_to_ptr.vmem [resolvable:$false] %s1351_s12 }
  0x7a   : > { %523 = vmatprep.subr.mxu1 %v502_v5  ;;  %1038 = vmatprep.subr.mxu0 %v1430_v0  ;;  %v494_v18 = vld [vmem:[#allocation8 + $0x98] sm:$0xff]  ;;  %v493_v19 = vld [vmem:[#allocation8 + $0x90] sm:$0xff]  ;;  %v492_v21 = vld [vmem:[#allocation8 + $0x88] sm:$0xff]  ;;  %s1353_s14 = scalar_lea.vmem %s1352_s12, 256  ;;  %p1354_p10 = scmp.lt.s32.totalorder %s864_s16, %s1352_s12 }
  0x7b   : > { %524 = vmatpush1.msra.mxu1 %v501_v6  ;;  %1039 = vmatpush3.msra.mxu0 %v395_v11  ;;  %v392_v20 = vld [vmem:[#allocation7 + $0x50] sm:$0xff]  ;;  %v491_v22 = vld [vmem:[#allocation8 + $0x80] sm:$0xff]  ;;  %v391_v23 = vld [vmem:[#allocation7 + $0x48] sm:$0xff] }
  0x7c   : > { %525 = vmatprep.subr.mxu1 %v500_v8  ;;  %1040 = vmatprep.subr.mxu0 %v1430_v0  ;;  %v490_v24 = vld [vmem:[#allocation8 + $0x78] sm:$0xff]  ;;  %v489_v25 = vld [vmem:[#allocation8 + $0x70] sm:$0xff]  ;;  %v390_v26 = vld [vmem:[#allocation7 + $0x40] sm:$0xff]  ;;  %v667_v8 = vand.u32 127, %v509_v52 }
  0x7d   : > { %526 = vmatpush1.msra.mxu1 %v499_v10  ;;  %1041 = vmatpush3.msra.mxu0 %v394_v14  ;;  %v488_v27 = vld [vmem:[#allocation8 + $0x68] sm:$0xff]  ;;  %v487_v28 = vld [vmem:[#allocation8 + $0x60] sm:$0xff]  ;;  %v389_v29 = vld [vmem:[#allocation7 + $0x38] sm:$0xff] }
  0x7e   : > { %527 = vmatprep.subr.mxu1 %v498_v12  ;;  %1042 = vmatprep.subr.mxu0 %v1430_v0  ;;  %v486_v30 = vld [vmem:[#allocation8 + $0x58] sm:$0xff]  ;;  %v485_v31 = vld [vmem:[#allocation8 + $0x50] sm:$0xff]  ;;  %v484_v33 = vld [vmem:[#allocation8 + $0x48] sm:$0xff]  ;;  %vm668_vm1 = vcmp.lt.s32.totalorder %v667_v8, 10 }
  0x7f   : > { %528 = vmatpush1.msra.mxu1 %v497_v13  ;;  %1043 = vmatpush3.msra.mxu0 %v393_v17  ;;  %v388_v32 = vld [vmem:[#allocation7 + $0x30] sm:$0xff]  ;;  %v483_v34 = vld [vmem:[#allocation8 + $0x40] sm:$0xff]  ;;  %v387_v35 = vld [vmem:[#allocation7 + $0x28] sm:$0xff] }
  0x80   : > { %529 = vmatprep.subr.mxu1 %v496_v15  ;;  %1044 = vmatprep.subr.mxu0 %v1430_v0  ;;  %v482_v36 = vld [vmem:[#allocation8 + $0x38] sm:$0xff]  ;;  %v481_v37 = vld [vmem:[#allocation8 + $0x30] sm:$0xff]  ;;  %v386_v38 = vld [vmem:[#allocation7 + $0x20] sm:$0xff] }
  0x81   : > { %530 = vmatpush1.msra.mxu1 %v495_v16  ;;  %1045 = vmatpush3.msra.mxu0 %v392_v20  ;;  %v480_v39 = vld [vmem:[#allocation8 + $0x28] sm:$0xff]  ;;  %v479_v40 = vld [vmem:[#allocation8 + $0x20] sm:$0xff]  ;;  %v385_v41 = vld [vmem:[#allocation7 + $0x18] sm:$0xff] }
  0x82   : > { %531 = vmatprep.subr.mxu1 %v494_v18  ;;  %1046 = vmatprep.subr.mxu0 %v1430_v0  ;;  %v478_v42 = vld [vmem:[#allocation8 + $0x18] sm:$0xff]  ;;  %v477_v43 = vld [vmem:[#allocation8 + $0x10] sm:$0xff]  ;;  %v476_v45 = vld [vmem:[#allocation8 + $0x8] sm:$0xff] }
  0x83   : > { %532 = vmatpush1.msra.mxu1 %v493_v19  ;;  %1047 = vmatpush3.msra.mxu0 %v391_v23  ;;  %v384_v44 = vld [vmem:[#allocation7 + $0x10] sm:$0xff]  ;;  %v475_v46 = vld [vmem:[#allocation8] sm:$0xff]  ;;  %v383_v47 = vld [vmem:[#allocation7 + $0x8] sm:$0xff] }
  0x84   : > { %533 = vmatprep.subr.mxu1 %v492_v21  ;;  %1048 = vmatprep.subr.mxu0 %v1430_v0  ;;  %v380_v48 = vld [vmem:[#allocation5] sm:$0xff]  ;;  %v382_v49 = vld [vmem:[#allocation7] sm:$0xff]  ;;  %v381_v51 = vld [vmem:[#allocation5 + $0x8] sm:$0xff] }
  0x85   : > { %534 = vmatpush1.msra.mxu1 %v491_v22  ;;  %1049 = vmatpush3.msra.mxu0 %v390_v26  ;;  %v379_v50 = vld [vmem:[%s1640_s4] sm:$0xff]  ;;  %v770_v18 = vld [vmem:[#allocation10 + $0x78] sm:$0xff]  ;;  %v769_v19 = vld [vmem:[#allocation10 + $0x70] sm:$0xff]  ;;  %s1347_s4 = scalar_lea.vmem %s864_s16, 128 }
  0x86   : > { %535 = vmatprep.subr.mxu1 %v490_v24  ;;  %1050 = vmatprep.subr.mxu0 %v1430_v0  ;;  %v507_v55 = vld [vmem:[%s1760_s5] sm:$0x3]  ;;  %v768_v20 = vld [vmem:[#allocation10 + $0x68] sm:$0xff]  ;;  %v766_v22 = vld [vmem:[#allocation10 + $0x58] sm:$0xff]  ;;  %p1348_p0 = scmp.ne.s32.totalorder %s864_s16, %s1347_s4  ;;  %p1355_p11 = scmp.lt.s32.totalorder %s1353_s14, %s1347_s4 }
  0x87   : > { %536 = vmatpush1.msra.mxu1 %v489_v25  ;;  %1051 = vmatpush3.msra.mxu0 %v389_v29  ;;  %v512_v59 = vrot.slane %v507_v55, %v511_v54  ;;  %v987_v1 = vld [vmem:[%s1758_s3] ss:$0 sm:$0xff]  ;;  %v516_v5 = vrot.slane %v507_v55, %v515_v63  ;;  %v765_v23 = vld [vmem:[#allocation10 + $0x50] sm:$0xff]  ;;  %v764_v24 = vld [vmem:[#allocation10 + $0x48] sm:$0xff] }
  0x88   : > { %537 = vmatprep.subr.mxu1 %v488_v27  ;;  %1052 = vmatprep.subr.mxu0 %v1430_v0  ;;  %v767_v21 = vld [vmem:[#allocation10 + $0x60] sm:$0xff]  ;;  %v762_v26 = vld [vmem:[#allocation10 + $0x38] sm:$0xff]  ;;  %v761_v27 = vld [vmem:[#allocation10 + $0x30] sm:$0xff]  ;;  %p1349_p9 = pnand %p1348_p0, %p1787_p2  ;;  %p1356_p6 = por %p1355_p11, %p1354_p10 }
  0x89   : > { %538 = vmatpush1.msra.mxu1 %v487_v28  ;;  %1053 = vmatpush3.msra.mxu0 %v388_v32  ;;  %v763_v25 = vld [vmem:[#allocation10 + $0x40] sm:$0xff]  ;;  %v760_v28 = vld [vmem:[#allocation10 + $0x28] sm:$0xff] }
  0x8a   : > { %539 = vmatprep.subr.mxu1 %v486_v30  ;;  %1054 = vmatprep.subr.mxu0 %v1430_v0  ;;  %v759_v29 = vld [vmem:[#allocation10 + $0x20] sm:$0xff]  ;;  %v758_v30 = vld [vmem:[#allocation10 + $0x18] sm:$0xff]  ;;  %v756_v32 = vld [vmem:[#allocation10 + $0x8] sm:$0xff]  ;;  %p1350_p8 = pneg %p1349_p9 }
  0x8b   : > { %540 = vmatpush1.msra.mxu1 %v485_v31  ;;  %1055 = vmatpush3.msra.mxu0 %v387_v35  ;;  %v757_v31 = vld [vmem:[#allocation10 + $0x10] sm:$0xff] }
  0x8c   : > { %541 = vmatprep.subr.mxu1 %v484_v33  ;;  %1056 = vmatprep.subr.mxu0 %v1430_v0  ;;  %p1357_p4 = pnand %p1356_p6, %p1350_p8 }
  0x8d   : > { %542 = vmatpush1.msra.mxu1 %v483_v34  ;;  %1057 = vmatpush3.msra.mxu0 %v386_v38 }
  0x8e   : > { %543 = vmatprep.subr.mxu1 %v482_v36  ;;  %1058 = vmatprep.subr.mxu0 %v1430_v0  ;;  %v755_v36 = vld [vmem:[#allocation10] sm:$0xff] }
  0x8f   : > { %544 = vmatpush1.msra.mxu1 %v481_v37  ;;  %1059 = vmatpush3.msra.mxu0 %v385_v41 }
  0x90   : > { %545 = vmatprep.subr.mxu1 %v480_v39  ;;  %1060 = vmatprep.subr.mxu0 %v1430_v0  ;;  %v989_v39 = vld [vmem:[%s1762_s7] ss:$0 sm:$0xff] }
  0x91   : > { %546 = vmatpush1.msra.mxu1 %v479_v40  ;;  %1061 = vmatpush3.msra.mxu0 %v384_v44 }
  0x92   : > { %547 = vmatprep.subr.mxu1 %v478_v42  ;;  %1062 = vmatprep.subr.mxu0 %v1430_v0 }
  0x93   : > { %548 = vmatpush1.msra.mxu1 %v477_v43  ;;  %1063 = vmatpush3.msra.mxu0 %v383_v47 }
  0x94   : > { %549 = vmatprep.subr.mxu1 %v476_v45  ;;  %1064 = vmatprep.subr.mxu0 %v1430_v0 }
  0x95   : > { %550 = vmatpush1.msra.mxu1 %v475_v46  ;;  %1065 = vmatpush3.msra.mxu0 %v382_v49 }
  0x96   : > { %584 = vmatmul.mubr.f32.vlgmr.msra.gmra.mxu1 %v380_v48  ;;  %1067 = vmatmul.mubr.f32.vlgmr.msra.gmra.mxu0 %v379_v50 }
  0x97   : > { %589 = vmatprep.mubr.f32.mxu1 %v1430_v0  ;;  %1069 = vmatprep.subr.mxu1 %v1430_v0 }
  0x98   : > { %1083 = vmatprep.subr.mxu0 %v1430_v0  ;;  %1115 = vmatprep.mubr.msk.f32.mxu0 %vm1431_vm0, %v1430_v0 }
  0x99   : > { %1084 = vmatpush3.msra.mxu0 %v770_v18 }
  0x9a   : > { %590 = vmatmul.mubr.f32.gmra.mxu1 %v381_v51  ;;  %1085 = vmatprep.subr.mxu0 %v1430_v0 }
  0x9b   : > { %1073 = vmatprep.mubr.msk.f32.mxu1 %vm1431_vm0, %v1430_v0  ;;  %1086 = vmatpush3.msra.mxu0 %v769_v19 }
  0x9c   : > { %1087 = vmatprep.subr.mxu0 %v1430_v0 }
  0x9d   : > { %1088 = vmatpush3.msra.mxu0 %v768_v20 }
  0x9e   : > { %1089 = vmatprep.subr.mxu0 %v1430_v0 }
  0x9f   : > { %1090 = vmatpush3.msra.mxu0 %v767_v21 }
  0xa0   : > { %1091 = vmatprep.subr.mxu0 %v1430_v0 }
  0xa1   : > { %1092 = vmatpush3.msra.mxu0 %v766_v22 }
  0xa2   : > { %1093 = vmatprep.subr.mxu0 %v1430_v0 }
  0xa3   : > { %1094 = vmatpush3.msra.mxu0 %v765_v23 }
  0xa4   : > { %1095 = vmatprep.subr.mxu0 %v1430_v0 }
  0xa5   : > { %1096 = vmatpush3.msra.mxu0 %v764_v24 }
  0xa6   : > { %1097 = vmatprep.subr.mxu0 %v1430_v0 }
  0xa7   : > { %1098 = vmatpush3.msra.mxu0 %v763_v25 }
  0xa8   : > { %1099 = vmatprep.subr.mxu0 %v1430_v0 }
  0xa9   : > { %1100 = vmatpush3.msra.mxu0 %v762_v26 }
  0xaa   : > { %1101 = vmatprep.subr.mxu0 %v1430_v0 }
  0xab   : > { %1102 = vmatpush3.msra.mxu0 %v761_v27 }
  0xac   : > { %1103 = vmatprep.subr.mxu0 %v1430_v0 }
  0xad   : > { %1104 = vmatpush3.msra.mxu0 %v760_v28 }
  0xae   : > { %1105 = vmatprep.subr.mxu0 %v1430_v0 }
  0xaf   : > { %1106 = vmatpush3.msra.mxu0 %v759_v29 }
  0xb0   : > { %1107 = vmatprep.subr.mxu0 %v1430_v0 }
  0xb1   : > { %1108 = vmatpush3.msra.mxu0 %v758_v30 }
  0xb2   : > { %1109 = vmatprep.subr.mxu0 %v1430_v0 }
  0xb3   : > { %1110 = vmatpush3.msra.mxu0 %v757_v31 }
  0xb4   : > { %1111 = vmatprep.subr.mxu0 %v1430_v0 }
  0xb5   : > { %1112 = vmatpush3.msra.mxu0 %v756_v32 }
  0xb6   : > { %1113 = vmatprep.subr.mxu0 %v1430_v0 }
  0xb7   : > { %1114 = vmatpush3.msra.mxu0 %v755_v36 }
 0x156   : > { %v585_v56 = vpop.f32.mrf.mxu1  ;;  %v471_v58 = vpop.f32.mrf.mxu0 }
 0x157   : > { %v586_v2 = vadd.f32 %v585_v56, %v512_v59  ;;  %v472_v4 = vadd.f32 %v987_v1, %v471_v58 }
 0x158   : > { %v587_v57 = vpop.f32.mrf.mxu1  ;;  %v1068_v61 = vpop.f32.mrf.mxu0 }
 0x159   : > { %v588_v7 = vadd.f32 %v587_v57, %v516_v5 }
 0x15a   : > { %v591_v60 = vpop.f32.mrf.mxu1 }
 0x15b   : > { %v592_v62 = vadd.f32 %v591_v60, %v512_v59 }
 0x15c   : > { %v593_v3 = vpop.f32.mrf.mxu1 }
 0x15d   : > { %1070 = vmatpush3.xpose.msra.mxu1 %v592_v62  ;;  %v594_v6 = vadd.f32 %v593_v3, %v516_v5 }
 0x15e   : > { %1071 = vmatprep.subr.mxu1 %v1430_v0 }
 0x161   : > { %1072 = vmatpush3.xpose.msra.mxu1 %v586_v2 }
 0x162   : > { %1076 = vmatprep.subr.mxu1 %v1430_v0 }
 0x164   : > { %1074 = vmatmul.mubr.f32.vlgmr.msra.gmra.mxu1 %v472_v4 }
 0x165   : > { %1077 = vmatpush3.msra.mxu1 %v594_v6  ;;  %1080 = vmatprep.mubr.msk.f32.mxu1 %vm1431_vm0, %v1430_v0 }
 0x166   : > { %1078 = vmatprep.subr.mxu1 %v1430_v0 }
 0x167   : > { %1079 = vmatpush3.msra.mxu1 %v588_v7 }
 0x224   : > { %v662_v9 = vpop.f32.mrf.mxu1 }
 0x225   : > { %v669_v10 = vsel %vm668_vm1, %v662_v9, -1e+30 }
 0x226   : > { %v1075_v11 = vpop.f32.mrf.mxu1  ;;  %v671_v12 = vsel %vm670_vm2, %v669_v10, -inf }
 0x227   : > { %672 = vmax.xlane.f32.xlu0 %v671_v12 }
 0x2b0   : > { %v673_v13 = vpop.xlane.xlu0 %672 }
 0x2b1   : > { %v674_v14 = vsub.f32 %v669_v10, %v673_v13 }
 0x2b3   : > { %v675_v15 = vmul.f32 1.442695, %v674_v14 }
 0x2b5   : > { %1211 = vpow2.f32 %v675_v15 }
 0x2c2   : > { %v1212_v16 = vpop.eup %1211 }
 0x2c3   : > { %v677_v17 = vsel %vm670_vm2, %v1212_v16, 0.0 }
 0x2c4   : > { %678 = vadd.xlane.f32.xlu0 %v677_v17 }
 0x34d   : > { %v679_v33 = vpop.xlane.xlu0 %678 }
 0x34e   : > { %1213 = vrcp.f32 %v679_v33 }
 0x35b   : > { %v1214_v34 = vpop.eup %1213 }
 0x35c   : > { %v681_v35 = vmul.f32 %v1214_v34, %v1212_v16 }
 0x35e   : > { %1081 = vmatmul.mubr.msk.f32.vlgmr.msra.gmra.mxu1 %vm670_vm2, %v681_v35 }
 0x41e   : > { %v751_v37 = vpop.f32.mrf.mxu1 }
 0x41f   : > { %1116 = vmatmul.mubr.f32.vlgmr.msra.gmra.mxu0 %v751_v37 }
 0x420   : > { %v1082_v38 = vpop.f32.mrf.mxu1 }
 0x4df   : > { %v844_v0 = vpop.f32.mrf.mxu0 }
 0x4e0   : > { %v845_v40 = vadd.f32 %v989_v39, %v844_v0 }
 0x4e1   : > { %v1117_v41 = vpop.f32.mrf.mxu0 }
 0x4e2   : > { %848 = vst [vmem:[%s378_s21] sm:$0xff] %v845_v40 }
 0x4e3   : > { %1360 = shalt.err (!%p1357_p4)
}
 0x4e4   : > { %s1361_s19 = scalar_lea.hbm %s1719_s20, 128  ;;  %s1365_s15 = scalar_lea.hbm %s1763_s8, 384 }
 0x4e5   : > { %p1362_p7 = scmp.ne.s32.totalorder %s1719_s20, %s1361_s19  ;;  %p1366_p5 = scmp.lt.s32.totalorder %s1719_s20, %s1763_s8 }
 0x4e6   : > { %p1367_p12 = scmp.lt.s32.totalorder %s1365_s15, %s1361_s19 }
 0x4e7   : > { %p1363_p1 = pnand %p1362_p7, %p1787_p2 }
 0x4e8   : > { %p1368_p13 = por %p1367_p12, %p1366_p5 }
 0x4e9   : > { %p1364_p3 = pneg %p1363_p1 }
 0x4eb   : > { %p1369_p0 = pnand %p1368_p13, %p1364_p3 }
 0x4ed   : > { %1372 = shalt.err (!%p1369_p0)
}
 0x4ee   : > { %1136 = dma.vmem_to_hbm [thread:$0]  (%p1787_p2), %s864_s16, 128, %s1719_s20, %s850_s2  }
 0x4ef PF: > { %p1168_p9 = scmp.ge.s32.totalorder %s1419_s30, 2  ;;  %s875_s18 = sand.u32 1, %s1407_s27  }
 0x4f0   : > { %p1788_p8 = scmp.ne.s32.totalorder %s1779_s13, 0  ;;  %s876_s21 = scalar_lea.sflag [#allocation4], %s875_s18 }
 0x4f2   : > { %p1156_p10 = pnand %p1168_p9, %p1788_p8 }
 0x4f4   : > { %p1157_p11 = pneg %p1156_p10 }
 0x4f6   : > { %1402 = dma.done.wait (%p1157_p11), %s876_s21, 128  }
 0x4f7   : > { %1404 = vsyncadd (%p1157_p11), %s876_s21, 4294967168  ;;  %p23_p6 = scmp.ge.s32.totalorder %s1571_s23, 5   ;;  %s1789_s27 = smov %s1411_s28 }
 0x4f8   : > { %s1790_s28 = smov %s1415_s29  ;;  %s1791_s29 = smov %s1582_s26 }
 0x4f9   : > { %s1792_s30 = smov %s1571_s23  ;;  %25 = sbr.rel (!%p23_p6) target bundleno = 11 (0xb), region = 113 }
 0x4fe   :  { %881 = vsyncpa [#allocation3], 1 }
 0x4ff   :  { %883 = vsyncpa [#allocation3 + $0x1], 1 }
 0x500   :  { %884 = vsyncpa [#allocation6], 1 }
 0x501   :  { %885 = vsyncpa [#allocation9], 1 }
 0x502   :  { %886 = vsyncpa [#allocation4], 1 }
 0x503   :  { %888 = vsyncpa [#allocation4 + $0x1], 1 }

</bundles_post_ra>
